<compile_context>
chip_gen: v7x
topology: tpu7x:2x2x1
jax: 0.10.0
libtpu: 0.0.40
codegen_flags: <defaults>
</compile_context>

<pallas_src>
import functools

import jax
import jax.numpy as jnp
from jax.experimental import pallas as pl
from jax.experimental.pallas import tpu as pltpu


def _lsr_loss_kernel(pre_ref, label_ref, out_ref, *, para_lsr, batch, block_rows):
    """One batch tile -> partial sum of the label-smoothed CE loss.

    pre_ref:   (block_rows, c) logits tile (f32/bf16; upcast to f32 in-kernel)
    label_ref: (block_rows, 1) int32 class indices
    out_ref:   (1, 8, 128) f32 -- this tile's partial loss sum, broadcast.
    """
    i = pl.program_id(0)

    pre = pre_ref[...].astype(jnp.float32)           # (tm, c)
    labels = label_ref[...]                           # (tm, 1) int32
    tm, c = pre.shape

    # Numerically stable log-softmax pieces, without materializing logp.
    m = jnp.max(pre, axis=-1, keepdims=True)                              # (tm,1)
    shifted = pre - m                                                     # (tm,c)
    lse = jnp.log(jnp.sum(jnp.exp(shifted), axis=-1, keepdims=True))      # (tm,1)
    sum_shifted = jnp.sum(shifted, axis=-1, keepdims=True)                # (tm,1)

    col_ids = jax.lax.broadcasted_iota(jnp.int32, (tm, c), 1)
    picked = jnp.sum(jnp.where(col_ids == labels, shifted, jnp.float32(0.0)),
                     axis=-1, keepdims=True)                              # (tm,1)

    # loss_row = -sum_j one_hot_j * logp_j
    #          = -( prob*(sum(shifted) - c*lse) + (1-a)*(picked - lse) )
    prob = jnp.float32(para_lsr / c)
    per_row = -(prob * (sum_shifted - jnp.float32(c) * lse)
                + jnp.float32(1.0 - para_lsr) * (picked - lse))           # (tm,1)

    # Mask padded rows of the final partial batch tile.  The where-select also
    # prevents NaN/inf from garbage padded data from reaching the partial sum.
    row_ids = jax.lax.broadcasted_iota(jnp.int32, (tm, 1), 0) + i * block_rows
    per_row = jnp.where(row_ids < batch, per_row, jnp.float32(0.0))

    partial = jnp.sum(per_row)                       # scalar f32
    out_ref[...] = jnp.broadcast_to(partial, out_ref.shape)


def cross_entropy_loss_lsr(pre, label, para_lsr=0.2, size_average=True,
                           block_rows=None):
    """JAX/Pallas equivalent of CrossEntropyLoss_LSR.forward.

    pre:   (b, c) float logits.  bf16 is the recommended fast path (halves HBM
           traffic); math is done in f32 inside the kernel.
    label: (b,)   integer class indices.
    Returns a scalar float32 loss (mean if size_average else sum).
    """
    b, c = pre.shape
    label2d = label.astype(jnp.int32).reshape(b, 1)
    itemsize = jnp.dtype(pre.dtype).itemsize
    sublane = max(8, 32 // itemsize)        # 8 (f32), 16 (bf16), 32 (int8/fp8)

    # Per-generation VMEM capacity (v7x: 64 MiB per TC, v5e/v6e: 128 MiB).
    try:
        info = pltpu.get_tpu_info()
        vmem_cap = int(getattr(info, "vmem_capacity_bytes", 64 * 1024 * 1024))
    except Exception:  # e.g. not on a TPU backend at trace time
        vmem_cap = 64 * 1024 * 1024

    # Working-set model per batch row: 2x double-buffered input tile
    # + ~3 f32-tile elementwise/reduction intermediates + the label column.
    bytes_per_row = c * (2 * itemsize + 3 * 4) + 2 * 4
    vmem_budget = min(vmem_cap * 3 // 4, 96 * 1024 * 1024)
    padded_b = -(-b // sublane) * sublane

    if block_rows is None:
        rows = max(sublane, vmem_budget // max(1, bytes_per_row))
        block_rows = int(min((rows // sublane) * sublane, padded_b))
    block_rows = max(sublane, (int(block_rows) // sublane) * sublane)

    num_tiles = pl.cdiv(b, block_rows)

    working_set = block_rows * bytes_per_row + 4 * 8 * 128 * 4  # + partial-out bufs
    vmem_limit = int(min(max(16 * 1024 * 1024, working_set + 2 * 1024 * 1024),
                         min(100 * 1024 * 1024, vmem_cap * 15 // 16)))

    kernel = functools.partial(
        _lsr_loss_kernel,
        para_lsr=float(para_lsr),
        batch=b,
        block_rows=block_rows,
    )

    cost = pl.CostEstimate(
        flops=10 * b * c,                        # elementwise + reductions
        transcendentals=b * c + b,               # exp per logit, log per row
        bytes_accessed=b * c * itemsize + b * 4 + num_tiles * 8 * 128 * 4,
    )

    partials = pl.pallas_call(
        kernel,
        out_shape=jax.ShapeDtypeStruct((num_tiles, 8, 128), jnp.float32),
        grid=(num_tiles,),
        in_specs=[
            pl.BlockSpec((block_rows, c), lambda i: (i, 0)),
            pl.BlockSpec((block_rows, 1), lambda i: (i, 0)),
        ],
        out_specs=pl.BlockSpec((1, 8, 128), lambda i: (i, 0, 0)),
        compiler_params=pltpu.CompilerParams(
            dimension_semantics=("parallel",),   # no carried accumulator
            vmem_limit_bytes=vmem_limit,
        ),
        cost_estimate=cost,
    )(pre, label2d)

    loss = jnp.sum(partials[:, 0, 0])
    if size_average:
        loss = loss / jnp.float32(b)
    return loss


def _reference_lsr(pre, label, para_lsr=0.2, size_average=True):
    b, c = pre.shape
    prob = para_lsr / c
    one_hot = jnp.full((b, c), prob, dtype=jnp.float32)
    one_hot = one_hot.at[jnp.arange(b), label].add(1.0 - para_lsr)
    logp = jax.nn.log_softmax(pre.astype(jnp.float32), axis=-1)
    loss = jnp.sum(-one_hot * logp, axis=1)
    return jnp.mean(loss) if size_average else jnp.sum(loss)


if __name__ == "__main__":
    key = jax.random.PRNGKey(0)
    k1, k2, k3, k4, k5, k6 = jax.random.split(key, 6)

    # Case 1: tiny single-tile case (matches the original module's toy shapes).
    b1, c1 = 8, 16
    pre1 = jax.random.normal(k1, (b1, c1), dtype=jnp.float32)
    lbl1 = jax.random.randint(k2, (b1,), 0, c1, dtype=jnp.int32)
    out1 = jax.block_until_ready(
        cross_entropy_loss_lsr(pre1, lbl1, para_lsr=0.2, size_average=True))
    ref1 = _reference_lsr(pre1, lbl1, 0.2, True)
    assert jnp.allclose(out1, ref1, atol=1e-5, rtol=1e-5), (out1, ref1)

    # Case 2: multi-tile grid with a padded final batch tile, size_average=False.
    b2, c2 = 20, 128
    pre2 = jax.random.normal(k3, (b2, c2), dtype=jnp.float32)
    lbl2 = jax.random.randint(k4, (b2,), 0, c2, dtype=jnp.int32)
    out2 = jax.block_until_ready(
        cross_entropy_loss_lsr(pre2, lbl2, para_lsr=0.2, size_average=False,
                               block_rows=8))
    ref2 = _reference_lsr(pre2, lbl2, 0.2, False)
    assert jnp.allclose(out2, ref2, atol=1e-4, rtol=1e-5), (out2, ref2)

    # Case 3: bf16 fast path (16-row sublane alignment), auto tile sizing.
    b3, c3 = 32, 64
    pre3 = jax.random.normal(k5, (b3, c3), dtype=jnp.float32).astype(jnp.bfloat16)
    lbl3 = jax.random.randint(k6, (b3,), 0, c3, dtype=jnp.int32)
    out3 = jax.block_until_ready(
        cross_entropy_loss_lsr(pre3, lbl3, para_lsr=0.2, size_average=True))
    ref3 = _reference_lsr(pre3, lbl3, 0.2, True)
    assert jnp.allclose(out3, ref3, atol=1e-4, rtol=1e-4), (out3, ref3)

    print("KERNEL_OK")
</pallas_src>

<mosaic_0001>
module attributes {stable_mosaic.version = 11 : i64} {
  func.func @_lsr_loss_kernel(%arg0: i32, %arg1: memref<8x16xf32, #tpu.memory_space<vmem>>, %arg2: memref<8x1xi32, #tpu.memory_space<vmem>>, %arg3: memref<1x8x128xf32, #tpu.memory_space<vmem>>) attributes {dimension_semantics = [#tpu.dimension_semantics<parallel>], iteration_bounds = array<i64: 1>, scalar_prefetch = 0 : i64, scratch_operands = 0 : i64, tpu.core_type = #tpu.core_type<tc>, window_params = [{transform_indices = @transform_0, window_bounds = array<i64: 8, 16>}, {transform_indices = @transform_1, window_bounds = array<i64: 8, 1>}, {transform_indices = @transform_2, window_bounds = array<i64: 1, 8, 128>}]} {
    %c0 = arith.constant 0 : index
    %c0_0 = arith.constant 0 : index
    %0 = vector.load %arg1[%c0, %c0_0] : memref<8x16xf32, #tpu.memory_space<vmem>>, vector<8x16xf32>
    %c0_1 = arith.constant 0 : index
    %c0_2 = arith.constant 0 : index
    %1 = vector.load %arg2[%c0_1, %c0_2] : memref<8x1xi32, #tpu.memory_space<vmem>>, vector<8x1xi32>
    %cst = arith.constant dense<0xFF800000> : vector<8xf32>
    %2 = vector.multi_reduction <maximumf>, %0, %cst [1] : vector<8x16xf32> to vector<8xf32>
    %3 = vector.shape_cast %2 : vector<8xf32> to vector<8x1xf32>
    %4 = vector.broadcast %3 : vector<8x1xf32> to vector<8x16xf32>
    %5 = arith.subf %0, %4 : vector<8x16xf32>
    %6 = math.exp %5 : vector<8x16xf32>
    %cst_3 = arith.constant dense<0.000000e+00> : vector<8xf32>
    %7 = vector.multi_reduction <add>, %6, %cst_3 [1] : vector<8x16xf32> to vector<8xf32>
    %8 = vector.shape_cast %7 : vector<8xf32> to vector<8x1xf32>
    %9 = math.log %8 : vector<8x1xf32>
    %cst_4 = arith.constant dense<0.000000e+00> : vector<8xf32>
    %10 = vector.multi_reduction <add>, %5, %cst_4 [1] : vector<8x16xf32> to vector<8xf32>
    %11 = vector.shape_cast %10 : vector<8xf32> to vector<8x1xf32>
    %12 = tpu.iota {dimensions = array<i32: 1>} : vector<8x16xi32>
    %13 = vector.broadcast %1 : vector<8x1xi32> to vector<8x16xi32>
    %14 = arith.cmpi eq, %12, %13 : vector<8x16xi32>
    %cst_5 = arith.constant 0.000000e+00 : f32
    %15 = vector.broadcast %cst_5 : f32 to vector<8x16xf32>
    %16 = arith.select %14, %5, %15 : vector<8x16xi1>, vector<8x16xf32>
    %cst_6 = arith.constant dense<0.000000e+00> : vector<8xf32>
    %17 = vector.multi_reduction <add>, %16, %cst_6 [1] : vector<8x16xf32> to vector<8xf32>
    %18 = vector.shape_cast %17 : vector<8xf32> to vector<8x1xf32>
    %cst_7 = arith.constant 1.600000e+01 : f32
    %19 = vector.broadcast %cst_7 : f32 to vector<8x1xf32>
    %20 = arith.mulf %19, %9 : vector<8x1xf32>
    %21 = arith.subf %11, %20 : vector<8x1xf32>
    %cst_8 = arith.constant 1.250000e-02 : f32
    %22 = vector.broadcast %cst_8 : f32 to vector<8x1xf32>
    %23 = arith.mulf %22, %21 : vector<8x1xf32>
    %24 = arith.subf %18, %9 : vector<8x1xf32>
    %cst_9 = arith.constant 8.000000e-01 : f32
    %25 = vector.broadcast %cst_9 : f32 to vector<8x1xf32>
    %26 = arith.mulf %25, %24 : vector<8x1xf32>
    %27 = arith.addf %23, %26 : vector<8x1xf32>
    %cst_10 = arith.constant 0.000000e+00 : f32
    %28 = vector.broadcast %cst_10 : f32 to vector<8x1xf32>
    %29 = arith.subf %28, %27 : vector<8x1xf32>
    %30 = tpu.iota {dimensions = array<i32: 0>} : vector<8x1xi32>
    %c8_i32 = arith.constant 8 : i32
    %31 = arith.muli %arg0, %c8_i32 : i32
    %32 = vector.broadcast %31 : i32 to vector<8x1xi32>
    %33 = arith.addi %30, %32 : vector<8x1xi32>
    %c8_i32_11 = arith.constant 8 : i32
    %34 = vector.broadcast %c8_i32_11 : i32 to vector<8x1xi32>
    %35 = arith.cmpi slt, %33, %34 : vector<8x1xi32>
    %cst_12 = arith.constant 0.000000e+00 : f32
    %36 = vector.broadcast %cst_12 : f32 to vector<8x1xf32>
    %37 = arith.select %35, %29, %36 : vector<8x1xi1>, vector<8x1xf32>
    %38 = vector.shape_cast %37 : vector<8x1xf32> to vector<1x8x1xf32>
    %cst_13 = arith.constant dense<0.000000e+00> : vector<1xf32>
    %39 = vector.multi_reduction <add>, %38, %cst_13 [1, 2] : vector<1x8x1xf32> to vector<1xf32>
    %40 = vector.shape_cast %39 : vector<1xf32> to vector<1x1x1xf32>
    %41 = vector.extract %40[0, 0, 0] : f32 from vector<1x1x1xf32>
    %42 = vector.broadcast %41 : f32 to vector<1x8x128xf32>
    %c0_14 = arith.constant 0 : index
    %c0_15 = arith.constant 0 : index
    %c0_16 = arith.constant 0 : index
    %43 = vector.load %arg3[%c0_14, %c0_15, %c0_16] : memref<1x8x128xf32, #tpu.memory_space<vmem>>, vector<1x8x128xf32>
    tpu.vector_store %arg3[%c0_14, %c0_15, %c0_16], %42 {strides = array<i32>} : memref<1x8x128xf32, #tpu.memory_space<vmem>>, vector<1x8x128xf32>,
    return
  }
  func.func @transform_0(%arg0: i32) -> (i32, i32) {
    %c0_i32 = arith.constant 0 : i32
    %c0_i32_0 = arith.constant 0 : i32
    return %arg0, %c0_i32 : i32, i32
  }
  func.func @transform_1(%arg0: i32) -> (i32, i32) {
    %c0_i32 = arith.constant 0 : i32
    %c0_i32_0 = arith.constant 0 : i32
    return %arg0, %c0_i32 : i32, i32
  }
  func.func @transform_2(%arg0: i32) -> (i32, i32, i32) {
    %c0_i32 = arith.constant 0 : i32
    %c0_i32_0 = arith.constant 0 : i32
    %c0_i32_1 = arith.constant 0 : i32
    return %arg0, %c0_i32, %c0_i32_0 : i32, i32, i32
  }
}

</mosaic_0001>

<bundles_post_ra>
// kernel: tpu_custom_call.1
= control target key start
LH: loop header
LB: loop body
LE: loop exit
PB: predicated region body
PF: predicated region fallthrough
CT: control target
= control target key end

     0   :  { %vm14_vm0 = vcmask 130048   ;;  %s152_s0 = inlined_call_operand.vmem [shape: f32[8,16], index: 0, kind: input, shape index: {}]   ;;  %s153_s1 = inlined_call_operand.vmem [shape: s32[8,1], index: 1, kind: input, shape index: {}]   ;;  %s154_s2 = inlined_call_operand.hbm [shape: f32[1,8,128], index: 2, kind: output, shape index: {}]  }
   0x1   :  { %v12_v0 = vld [vmem:[%s152_s0] sm:$0xff] }
   0x2   :  { %7 = vsyncpa [#allocation3], 0  ;;  %v15_v1 = vsel %vm14_vm0, %v12_v0, -inf  ;;  %v113_v2 = vmov 0   ;;  %v13_v3 = vld [vmem:[%s153_s1] sm:$0xff]  ;;  %v29_v7 = vlaneseq  ;;  %vm53_vm2 = vcmask 7168  }
   0x3   :  { %84 = vset.pattern.permute.xlu0 %v113_v2  ;;  %s114_s0 = smov [#allocation2]  }
   0x4   :  { %16 = vmax.xlane.f32.xlu0 %v15_v1  ;;  %v30_v8 = vand.u32 127, %v29_v7  ;;  %s72_s1 = sshll.u32 %s114_s0, 4  ;;  %s73_s1 = int_to_ptr.vmem [resolvable:$true] %s72_s1 }
   0x5   :  { %s89_s14 = scalar_lea.vmem %s73_s1, 128  ;;  %p94_p1 = scmp.lt.s32.totalorder %s73_s1, %s73_s1 }
   0x6   :  { %p90_p0 = scmp.ne.s32.totalorder %s73_s1, %s89_s14  ;;  %p95_p2 = scmp.lt.s32.totalorder %s89_s14, %s89_s14 }
   0x8   :  { %p96_p3 = por %p95_p2, %p94_p1 }
   0xa   :  { %p97_p4 = pnand %p96_p3, %p90_p0 }
  0x1a   :  { %32 = vperm.xlu0 %84, %v13_v3  }
  0x91   :  { %v17_v4 = vpop.xlane.xlu0 %16 }
  0x92   :  { %v18_v5 = vsub.f32 %v12_v0, %v17_v4 }
  0x94   :  { %v19_v6 = vmul.f32 1.442695, %v18_v5  ;;  %v26_v12 = vsel %vm14_vm0, %v18_v5, 0.0 }
  0x96   :  { %85 = vpow2.f32 %v19_v6 }
  0x99   :  { %v33_v10 = vpop.permute.xlu0 %32 }
  0x9a   :  { %vm34_vm1 = vcmp.eq.s32.totalorder %v30_v8, %v33_v10 }
  0x9b   :  { %v35_v13 = vsel %vm34_vm1, %v18_v5, 0.0 }
  0x9c   :  { %v36_v14 = vsel %vm14_vm0, %v35_v13, 0.0 }
  0xa0   :  { %v86_v9 = vpop.eup %85 }
  0xa1   :  { %v21_v11 = vsel %vm14_vm0, %v86_v9, 0.0 }
  0xa2   :  { %22 = vadd.xlane.f32.xlu1 %v21_v11 }
  0xa6   :  { %27 = vadd.xlane.f32.xlu1 %v26_v12 }
  0xaa   :  { %37 = vadd.xlane.f32.xlu1 %v36_v14 }
 0x12f   :  { %v23_v15 = vpop.xlane.xlu1 %22 }
 0x130   :  { %87 = vlog2.f32 %v23_v15 }
 0x133   :  { %v28_v16 = vpop.xlane.xlu1 %27 }
 0x137   :  { %v38_v19 = vpop.xlane.xlu1 %37 }
 0x13a   :  { %v88_v17 = vpop.eup %87 }
 0x13b   :  { %v25_v18 = vmul.f32 0.6931472, %v88_v17 }
 0x13d   :  { %v39_v20 = vmul.f32 16.0, %v25_v18  ;;  %v42_v21 = vsub.f32 %v38_v19, %v25_v18 }
 0x13f   :  { %v40_v22 = vsub.f32 %v28_v16, %v39_v20  ;;  %v43_v24 = vmul.f32 0.8, %v42_v21 }
 0x141   :  { %v41_v23 = vmul.f32 0.0125, %v40_v22 }
 0x143   :  { %v44_v25 = vadd.f32 %v43_v24, %v41_v23 }
 0x145   :  { %v45_v26 = vsub.f32 0.0, %v44_v25 }
 0x147   :  { %v54_v27 = vsel %vm53_vm2, %v45_v26, 0.0 }
 0x148   :  { %55 = vadd.xlane.f32.xlu1 %v54_v27 }
 0x1d5   :  { %v56_v28 = vpop.xlane.xlu1 %55 }
 0x1d6   :  { %v57_v29 = vrot.slane %v56_v28, 4 }
 0x1d8   :  { %v58_v30 = vadd.f32 %v57_v29, %v56_v28 }
 0x1da   :  { %v59_v31 = vrot.slane %v58_v30, 2 }
 0x1dc   :  { %v60_v32 = vadd.f32 %v59_v31, %v58_v30 }
 0x1de   :  { %v61_v33 = vrot.slane %v60_v32, 1 }
 0x1e0   :  { %v62_v34 = vadd.f32 %v61_v33, %v60_v32 }
 0x1e2   :  { %80 = vpush %v62_v34 }
 0x213   :  { %s81_s13 = spop %80 }
 0x214   :  { %v64_v35 = vstv %s81_s13 }
 0x215   :  { %65 = vst [vmem:[#allocation2] sm:$0xff] %v64_v35 }
 0x216   :  { %100 = shalt.err (!%p97_p4)
}
 0x217   :  { %s101_s17 = scalar_lea.hbm %s154_s2, 128 }
 0x218   :  { %p102_p5 = scmp.ne.s32.totalorder %s154_s2, %s101_s17  ;;  %p105_p6 = scmp.lt.u32.totalorder %s101_s17, %s154_s2 }
 0x21a   :  { %p107_p7 = pnand %p105_p6, %p102_p5 }
 0x21c   :  { %110 = shalt.err (!%p107_p7)
}
 0x21d   :  { %75 = dma.vmem_to_hbm [thread:$0]  %s73_s1, 128, %s154_s2, [#allocation3]  }
 0x21e   :  { %111 = dma.done.wait [#allocation3], 128  }
 0x21f   :  { %112 = vsyncadd [#allocation3], 4294967168 }
 0x220   :  { %79 = vsyncpa [#allocation3], 1 }

</bundles_post_ra>
